<compile_context>
chip_gen: v6e
topology: v6e:2x2x1
jax: 0.10.0
libtpu: 0.0.40
codegen_flags: <defaults>
</compile_context>

<pallas_src>
import functools
import math

import jax
import jax.numpy as jnp
from jax.experimental import pallas as pl
from jax.experimental.pallas import tpu as pltpu


def make_positional_encoding(d_model, max_seq_len=200, dtype=jnp.float32):
    """Vectorized replica of the PyTorch double loop building the PE buffer."""
    pos = jnp.arange(max_seq_len, dtype=jnp.float32)[:, None]          # (S, 1)
    k = jnp.arange(d_model, dtype=jnp.float32)[None, :]                # (1, D)
    angle = pos / jnp.power(10000.0, 2.0 * k / float(d_model))         # (S, D)
    even = (jnp.arange(d_model) % 2 == 0)[None, :]
    pe = jnp.where(even, jnp.sin(angle), jnp.cos(angle))
    return pe.astype(dtype)                                            # (max_seq_len, d_model)


def _posenc_kernel(x_ref, pe_ref, o_ref, *, scale):
    # x_ref : (bt, ts, d_model)  VMEM tile of activations
    # pe_ref: (ts, d_model)      matching PE rows (broadcast over the batch tile)
    # o_ref : (bt, ts, d_model)
    x = x_ref[...]
    pe = pe_ref[...]
    # Native-dtype compute (bf16 stays bf16 on v6e/v7x); Python scalar keeps x's dtype.
    o_ref[...] = (x * scale + pe[None, :, :].astype(x.dtype)).astype(o_ref.dtype)


@functools.partial(jax.jit, static_argnames=("ts", "bt", "donate_x"))
def positional_encoder(x, pe, *, ts=None, bt=None, donate_x=False):
    """x: (batch, seq, d_model); pe: (max_seq_len, d_model) -> (batch, seq, d_model)."""
    batch, seq, d_model = x.shape
    max_seq_len = pe.shape[0]
    if seq > max_seq_len:
        raise ValueError(f"seq_len={seq} exceeds max_seq_len={max_seq_len}")
    scale = math.sqrt(d_model)

    # Dropout is identity in eval mode (matches model.eval()).
    # TODO(synk): training-mode stochastic dropout (pltpu.prng_seed / prng_random_bits) not wired in.

    itemsize = jnp.dtype(x.dtype).itemsize

    # --- VMEM-budget-aware tiling (block bytes independent of batch) ---------------------------
    if ts is None:
        ts = min(seq, 256)                    # 256 is sublane-aligned; ts == seq when seq <= 256
    ts = int(min(ts, seq))
    if bt is None:
        target_block_bytes = 2 << 20          # ~2 MiB x-block: double-buffers on every chip
        bt = max(1, target_block_bytes // max(1, ts * d_model * itemsize))
    bt = int(min(bt, batch))

    grid = (pl.cdiv(batch, bt), pl.cdiv(seq, ts))   # partial edge blocks are masked by Pallas

    # PE rows for this sequence, in the activation dtype (halves PE traffic for bf16 x).
    pe_seq = pe[:seq].astype(x.dtype)

    # Explicit VMEM ceiling: double-buffered x-in + out + pe blocks, 2x headroom, <=48 MiB (v7x-safe).
    block_bytes = bt * ts * d_model * itemsize
    pe_block_bytes = ts * d_model * itemsize
    vmem_limit = int(min(max(4 * (2 * block_bytes + pe_block_bytes), 16 << 20), 48 << 20))

    cost = pl.CostEstimate(
        flops=2 * batch * seq * d_model,                              # one mul + one add / element
        transcendentals=0,
        bytes_accessed=(2 * batch * seq + seq) * d_model * itemsize,  # x in + out + pe (x.dtype)
    )

    return pl.pallas_call(
        functools.partial(_posenc_kernel, scale=scale),
        out_shape=jax.ShapeDtypeStruct((batch, seq, d_model), x.dtype),
        grid_spec=pltpu.PrefetchScalarGridSpec(
            num_scalar_prefetch=0,
            grid=grid,
            in_specs=[
                pl.BlockSpec((bt, ts, d_model), lambda b, i: (b, i, 0)),  # x tile
                pl.BlockSpec((ts, d_model), lambda b, i: (i, 0)),         # PE rows
            ],
            out_specs=pl.BlockSpec((bt, ts, d_model), lambda b, i: (b, i, 0)),
        ),
        compiler_params=pltpu.CompilerParams(
            dimension_semantics=("parallel", "parallel"),
            vmem_limit_bytes=vmem_limit,
        ),
        cost_estimate=cost,
        input_output_aliases=({0: 0} if donate_x else {}),
    )(x, pe_seq)


if __name__ == "__main__":
    key = jax.random.PRNGKey(0)

    # Small test shapes consistent with the module.
    batch, seq, d_model, max_seq_len = 2, 8, 32, 200
    x = jax.random.normal(key, (batch, seq, d_model), jnp.float32)
    pe = make_positional_encoding(d_model, max_seq_len)

    out = jax.block_until_ready(positional_encoder(x, pe))
    ref = x * math.sqrt(d_model) + pe[None, :seq, :]        # eval-mode dropout = identity
    assert out.shape == (batch, seq, d_model)
    assert jnp.allclose(out, ref, atol=1e-5, rtol=1e-5)

    # Exercise masked partial edge blocks (seq % ts != 0, batch % bt != 0) -- no wrapper padding.
    b2, s2 = 3, 20
    x2 = jax.random.normal(jax.random.PRNGKey(1), (b2, s2, d_model), jnp.float32)
    out2 = jax.block_until_ready(positional_encoder(x2, pe, ts=8, bt=2))
    ref2 = x2 * math.sqrt(d_model) + pe[None, :s2, :]
    assert jnp.allclose(out2, ref2, atol=1e-5, rtol=1e-5)

    print("KERNEL_OK")
</pallas_src>

<mosaic_0001>
module attributes {stable_mosaic.version = 11 : i64} {
  func.func @_posenc_kernel(%arg0: i32, %arg1: i32, %arg2: memref<2x8x32xf32, #tpu.memory_space<vmem>>, %arg3: memref<8x32xf32, #tpu.memory_space<vmem>>, %arg4: memref<2x8x32xf32, #tpu.memory_space<vmem>>) attributes {dimension_semantics = [#tpu.dimension_semantics<parallel>, #tpu.dimension_semantics<parallel>], iteration_bounds = array<i64: 1, 1>, scalar_prefetch = 0 : i64, scratch_operands = 0 : i64, tpu.core_type = #tpu.core_type<tc>, window_params = [{transform_indices = @transform_0, window_bounds = array<i64: 2, 8, 32>}, {transform_indices = @transform_1, window_bounds = array<i64: 8, 32>}, {transform_indices = @transform_2, window_bounds = array<i64: 2, 8, 32>}]} {
    %c0 = arith.constant 0 : index
    %c0_0 = arith.constant 0 : index
    %c0_1 = arith.constant 0 : index
    %0 = vector.load %arg2[%c0, %c0_0, %c0_1] : memref<2x8x32xf32, #tpu.memory_space<vmem>>, vector<2x8x32xf32>
    %c0_2 = arith.constant 0 : index
    %c0_3 = arith.constant 0 : index
    %1 = vector.load %arg3[%c0_2, %c0_3] : memref<8x32xf32, #tpu.memory_space<vmem>>, vector<8x32xf32>
    %cst = arith.constant 5.65685415 : f32
    %2 = vector.broadcast %cst : f32 to vector<2x8x32xf32>
    %3 = arith.mulf %0, %2 : vector<2x8x32xf32>
    %4 = vector.shape_cast %1 : vector<8x32xf32> to vector<1x8x32xf32>
    %5 = vector.broadcast %4 : vector<1x8x32xf32> to vector<2x8x32xf32>
    %6 = arith.addf %3, %5 : vector<2x8x32xf32>
    %c0_4 = arith.constant 0 : index
    %c0_5 = arith.constant 0 : index
    %c0_6 = arith.constant 0 : index
    %7 = vector.load %arg4[%c0_4, %c0_5, %c0_6] : memref<2x8x32xf32, #tpu.memory_space<vmem>>, vector<2x8x32xf32>
    tpu.vector_store %arg4[%c0_4, %c0_5, %c0_6], %6 {strides = array<i32>} : memref<2x8x32xf32, #tpu.memory_space<vmem>>, vector<2x8x32xf32>,
    return
  }
  func.func @transform_0(%arg0: i32, %arg1: i32) -> (i32, i32, i32) {
    %c0_i32 = arith.constant 0 : i32
    %c0_i32_0 = arith.constant 0 : i32
    return %arg0, %arg1, %c0_i32 : i32, i32, i32
  }
  func.func @transform_1(%arg0: i32, %arg1: i32) -> (i32, i32) {
    %c0_i32 = arith.constant 0 : i32
    %c0_i32_0 = arith.constant 0 : i32
    return %arg1, %c0_i32 : i32, i32
  }
  func.func @transform_2(%arg0: i32, %arg1: i32) -> (i32, i32, i32) {
    %c0_i32 = arith.constant 0 : i32
    %c0_i32_0 = arith.constant 0 : i32
    return %arg0, %arg1, %c0_i32 : i32, i32, i32
  }
}

</mosaic_0001>

<bundles_post_ra>
// kernel: positional_encoder.1
= control target key start
LH: loop header
LB: loop body
LE: loop exit
PB: predicated region body
PF: predicated region fallthrough
CT: control target
= control target key end

     0   :  { %s93_s0 = inlined_call_operand.vmem [shape: f32[2,8,32], index: 0, kind: input, shape index: {}]   ;;  %s94_s1 = inlined_call_operand.vmem [shape: f32[8,32], index: 1, kind: input, shape index: {}]   ;;  %s95_s2 = inlined_call_operand.hbm [shape: f32[2,8,32], index: 2, kind: output, shape index: {}]  }
   0x1   :  { %v12_v0 = vld [vmem:[%s93_s0] sm:$0xff]  ;;  %v13_v2 = vld [vmem:[%s93_s0 + $0x8] sm:$0xff] }
   0x2   :  { %v14_v1 = vld [vmem:[%s94_s1] sm:$0xff]  ;;  %v15_v3 = vmul.f32 5.656854, %v12_v0  ;;  %v16_v4 = vmul.f32 5.656854, %v13_v2 }
   0x3   :  { %7 = vsyncpa [#allocation3], 0  ;;  %vm19_vm0 = vcmask 261120   ;;  %s63_s15 = smov [#allocation2]  }
   0x4   :  { %s27_s16 = sshll.u32 %s63_s15, 4  ;;  %v17_v5 = vadd.f32 %v15_v3, %v14_v1  ;;  %v18_v6 = vadd.f32 %v16_v4, %v14_v1  ;;  %s28_s16 = int_to_ptr.vmem [resolvable:$true] %s27_s16 }
   0x5   :  { %s41_s17 = scalar_lea.vmem %s28_s16, 256  ;;  %p46_p1 = scmp.lt.s32.totalorder %s28_s16, %s28_s16 }
   0x6   :  { %20 = vst.msk [vmem:[#allocation2] sm:$0xff] %vm19_vm0, %v17_v5  ;;  %21 = vst.msk [vmem:[#allocation2 + $0x8] sm:$0xff] %vm19_vm0, %v18_v6  ;;  %p42_p0 = scmp.ne.s32.totalorder %s28_s16, %s41_s17  ;;  %p47_p2 = scmp.lt.s32.totalorder %s41_s17, %s41_s17 }
   0x8   :  { %p48_p3 = por %p47_p2, %p46_p1 }
   0xa   :  { %p49_p4 = pnand %p48_p3, %p42_p0 }
   0xc   :  { %52 = shalt.err (!%p49_p4)
}
   0xd   :  { %s64_s1 = smov 128   ;;  %s65_s0 = smov 8  }
   0xe   :  { %33 = dma.vmem_to_hbm [thread:$0]  %s28_s16, 256, %s95_s2, [#allocation3], %s64_s1, %s64_s1, %s65_s0  }
   0xf   :  { %61 = dma.done.wait [#allocation3], 256  }
  0x10   :  { %62 = vsyncadd [#allocation3], 4294967040 }
  0x11   :  { %37 = vsyncpa [#allocation3], 1 }

</bundles_post_ra>
